<compile_context>
chip_gen: v6e
topology: v6e:2x2x1
jax: 0.10.0
libtpu: 0.0.40
codegen_flags: <defaults>
</compile_context>

<pallas_src>
import functools

import jax
import jax.numpy as jnp
from jax.experimental import pallas as pl
from jax.experimental.pallas import tpu as pltpu

LANE = 128  # padded width of every feature dim (F, H, L)


def _round_up(n, m):
    return (n + m - 1) // m * m


def _sigmoid_f32(x):
    # 1 / (1 + exp(-x)); approx reciprocal lowers to the EUP slot so it
    # co-issues with MXU/VALU work instead of a VPU divide.
    return pl.reciprocal(1.0 + jnp.exp(-x), approx=True)


def _encode(x_ref, w1_ref, w2_ref, b_ref):
    """relu(enc1(x)) -> enc2 logits.  x_ref is bf16; accumulation stays f32."""
    h1 = jnp.dot(x_ref[...], w1_ref[...],
                 preferred_element_type=jnp.float32) + b_ref[0:1, :]
    h1 = jnp.maximum(h1, 0.0)
    mu_logit = jnp.dot(h1.astype(jnp.bfloat16), w2_ref[...],
                       preferred_element_type=jnp.float32) + b_ref[1:2, :]
    return mu_logit


def _decode(z_bf16, w3_ref, w4_ref, b_ref):
    """relu(dec1(z)) -> sigmoid(dec2(.))."""
    h2 = jnp.dot(z_bf16, w3_ref[...],
                 preferred_element_type=jnp.float32) + b_ref[2:3, :]
    h2 = jnp.maximum(h2, 0.0)
    return _sigmoid_f32(
        jnp.dot(h2.astype(jnp.bfloat16), w4_ref[...],
                preferred_element_type=jnp.float32) + b_ref[3:4, :])


def _vae_soft_kernel(x_ref, noise_ref, w1_ref, w2_ref, w3_ref, w4_ref, b_ref,
                     out_ref, *, inv_tau, mu_cols):
    mu_logit = _encode(x_ref, w1_ref, w2_ref, b_ref)          # (TB, 128) f32
    mu = _sigmoid_f32(mu_logit)                               # eps.probs

    # RelaxedBernoulli rsample: sigmoid((logits + logistic_noise) / tau).
    # Noise only exists for the L real latent lanes; padded lanes get 0 noise
    # and hit zero rows of w3, so they never contribute.
    logistic = noise_ref[...]                                 # (TB, L) f32
    tb, l = logistic.shape
    logistic = jnp.concatenate(
        [logistic, jnp.zeros((tb, LANE - l), jnp.float32)], axis=-1)
    z = _sigmoid_f32((mu_logit + logistic) * inv_tau)         # eps.rsample()

    recon = _decode(z.astype(jnp.bfloat16), w3_ref, w4_ref, b_ref)

    # Merge recon (lanes [0, 128-mu_cols)) and mu (lanes [128-mu_cols, 128))
    # into one lane-dense f32 store; the wrapper slices them apart.
    out_ref[...] = jnp.concatenate(
        [recon[:, :LANE - mu_cols], mu[:, :mu_cols]], axis=-1)


def _vae_hard_kernel(x_ref, w1_ref, w2_ref, w3_ref, w4_ref, b_ref,
                     out_ref, *, mu_cols):
    mu_logit = _encode(x_ref, w1_ref, w2_ref, b_ref)
    mu = _sigmoid_f32(mu_logit)

    # Straight-through forward value: z_soft = sigmoid(...) > 0 always, so
    # z = 0.5*(sign(z_soft)+1) == 1 identically -> the decoder is
    # batch-invariant.  Compute it once as a (1, 128) row and broadcast.
    w3_colsum = jnp.sum(w3_ref[...].astype(jnp.float32), axis=0, keepdims=True)
    h2 = jnp.maximum(w3_colsum + b_ref[2:3, :], 0.0)          # (1, 128)
    recon_row = _sigmoid_f32(
        jnp.dot(h2.astype(jnp.bfloat16), w4_ref[...],
                preferred_element_type=jnp.float32) + b_ref[3:4, :])
    recon = jnp.broadcast_to(recon_row, mu.shape)

    out_ref[...] = jnp.concatenate(
        [recon[:, :LANE - mu_cols], mu[:, :mu_cols]], axis=-1)


def pack_params(params):
    """Zero-pad every dim to 128, cast weights to bf16, pack biases (4,128) f32."""
    w1, b1, w2, b2, w3, b3, w4, b4 = params

    def pad_w(w):
        out = jnp.zeros((LANE, LANE), jnp.float32)
        out = out.at[: w.shape[0], : w.shape[1]].set(w)
        return out.astype(jnp.bfloat16)

    def pad_b(b):
        out = jnp.zeros((LANE,), jnp.float32)
        return out.at[: b.reshape(-1).shape[0]].set(b.reshape(-1))

    bp = jnp.stack([pad_b(b1), pad_b(b2), pad_b(b3), pad_b(b4)], axis=0)
    return pad_w(w1), pad_w(w2), pad_w(w3), pad_w(w4), bp


def _choose_batch_tile(B, block_b):
    """Big batch tile (amortizes ~0.35us/grid-step) but >=2 grid steps so the
    v7x megacore can shard the parallel batch axis when B allows it."""
    b8 = _round_up(max(B, 8), 8)
    tb = min(_round_up(block_b, 8), b8)
    if b8 // tb < 2:
        tb = max(8, _round_up((b8 + 1) // 2, 8))
    b_pad = _round_up(b8, tb)
    return tb, b_pad


@functools.partial(jax.jit, static_argnames=("tau", "hard", "block_b"))
def relaxed_bernoulli_vae_forward(x, params, noise_u=None, *, tau=0.5,
                                  hard=False, block_b=1024):
    """x: (B, F) f32.  noise_u: (B, L) Uniform(0,1) samples (soft mode only).

    Returns (recon (B, F), mu (B, L)) matching RelaxedBernoulliVAE.forward.
    """
    B, F = x.shape
    H = params[0].shape[1]
    L = params[2].shape[1]
    assert F <= LANE and H <= LANE and L <= LANE
    assert F + L <= LANE, "recon/mu cannot share one 128-lane output tile"

    w1p, w2p, w3p, w4p, bp = pack_params(params)

    TB, B_pad = _choose_batch_tile(B, block_b)
    grid = (B_pad // TB,)

    # Pad + cast in one op; the kernel feeds bf16 straight to the MXU.
    x_pad = jnp.pad(x.astype(jnp.bfloat16), ((0, B_pad - B), (0, LANE - F)))

    w_spec = pl.BlockSpec((LANE, LANE), lambda i: (0, 0))     # VMEM-resident
    in_specs = [pl.BlockSpec((TB, LANE), lambda i: (i, 0))]   # x tile (bf16)
    args = [x_pad]

    if hard:
        kernel = functools.partial(_vae_hard_kernel, mu_cols=L)
    else:
        if noise_u is None:
            raise ValueError("noise_u (B, L) Uniform(0,1) required when hard=False")
        # TODO(synk): noise is generated host-side because pltpu.prng_seed has
        # no CPU/interpret lowering; on-chip PRNG would remove this DMA stream.
        u = jnp.clip(noise_u.astype(jnp.float32), 1e-6, 1.0 - 1e-6)
        logistic = jnp.log(u) - jnp.log1p(-u)                 # (B, L) f32
        logistic = jnp.pad(logistic, ((0, B_pad - B), (0, 0)))
        in_specs.append(pl.BlockSpec((TB, L), lambda i: (i, 0)))
        args.append(logistic)
        kernel = functools.partial(_vae_soft_kernel,
                                   inv_tau=float(1.0 / tau), mu_cols=L)

    in_specs += [w_spec, w_spec, w_spec, w_spec,
                 pl.BlockSpec((4, LANE), lambda i: (0, 0))]   # packed biases
    args += [w1p, w2p, w3p, w4p, bp]

    combined = pl.pallas_call(
        kernel,
        out_shape=jax.ShapeDtypeStruct((B_pad, LANE), jnp.float32),
        grid=grid,
        in_specs=in_specs,
        out_specs=pl.BlockSpec((TB, LANE), lambda i: (i, 0)),
        compiler_params=pltpu.CompilerParams(
            dimension_semantics=("parallel",),   # v7x megacore shards batch
        ),
    )(*args)

    recon = combined[:B, :F]
    mu = combined[:B, LANE - L:]
    return recon, mu


def init_params(key, initial_feature_dim=102, hidden_dim=64, num_features=16):
    """Weights stored as (in, out) f32; biases as (out,) f32."""
    ks = jax.random.split(key, 8)

    def linear(kw, kb, fan_in, fan_out):
        bound = 1.0 / jnp.sqrt(fan_in)
        w = jax.random.uniform(kw, (fan_in, fan_out), jnp.float32, -bound, bound)
        b = jax.random.uniform(kb, (fan_out,), jnp.float32, -bound, bound)
        return w, b

    w1, b1 = linear(ks[0], ks[1], initial_feature_dim, hidden_dim)   # enc1
    w2, b2 = linear(ks[2], ks[3], hidden_dim, num_features)          # enc2
    w3, b3 = linear(ks[4], ks[5], num_features, hidden_dim)          # dec1
    w4, b4 = linear(ks[6], ks[7], hidden_dim, initial_feature_dim)   # dec2
    return (w1, b1, w2, b2, w3, b3, w4, b4)


def reference_forward(x, params, noise_u=None, *, tau=0.5, hard=False):
    """Pure-JAX reference.  Inputs to each matmul are quantized to bf16 to
    mirror the kernel's MXU inputs; everything else stays f32."""
    w1, b1, w2, b2, w3, b3, w4, b4 = params
    q = lambda a: a.astype(jnp.bfloat16).astype(jnp.float32)
    h1 = jnp.maximum(q(x) @ q(w1) + b1, 0.0)
    mu_logit = q(h1) @ q(w2) + b2
    mu = jax.nn.sigmoid(mu_logit)
    if hard:
        z = jnp.ones_like(mu_logit)           # 0.5*(sign(sigmoid)+1) == 1
    else:
        logistic = jnp.log(noise_u) - jnp.log1p(-noise_u)
        z = jax.nn.sigmoid((mu_logit + logistic) / tau)
    h2 = jnp.maximum(q(z) @ q(w3) + b3, 0.0)
    recon = jax.nn.sigmoid(q(h2) @ q(w4) + b4)
    return recon, mu


if __name__ == "__main__":
    B = 256
    INITIAL_FEATURE_DIM = 102
    HIDDEN_DIM = 64
    NUM_FEATURES = 16
    TAU = 0.5

    key = jax.random.PRNGKey(0)
    k_x, k_p, k_u = jax.random.split(key, 3)
    x = jax.random.uniform(k_x, (B, INITIAL_FEATURE_DIM), jnp.float32)
    params = init_params(k_p, INITIAL_FEATURE_DIM, HIDDEN_DIM, NUM_FEATURES)

    # --- hard=True: z == 1 identically -> fully deterministic check ---
    recon_h, mu_h = relaxed_bernoulli_vae_forward(x, params, tau=TAU, hard=True)
    recon_h, mu_h = jax.block_until_ready((recon_h, mu_h))
    recon_ref_h, mu_ref_h = reference_forward(x, params, tau=TAU, hard=True)
    assert recon_h.shape == (B, INITIAL_FEATURE_DIM)
    assert mu_h.shape == (B, NUM_FEATURES)
    assert jnp.allclose(mu_h, mu_ref_h, atol=2e-2, rtol=2e-2)
    assert jnp.allclose(recon_h, recon_ref_h, atol=2e-2, rtol=2e-2)

    # --- hard=False: shared host-side uniform noise -> deterministic check ---
    u = jax.random.uniform(k_u, (B, NUM_FEATURES), jnp.float32,
                           minval=1e-6, maxval=1.0 - 1e-6)
    recon_s, mu_s = relaxed_bernoulli_vae_forward(x, params, u, tau=TAU,
                                                  hard=False)
    recon_s, mu_s = jax.block_until_ready((recon_s, mu_s))
    recon_ref_s, mu_ref_s = reference_forward(x, params, u, tau=TAU, hard=False)
    assert recon_s.shape == (B, INITIAL_FEATURE_DIM)
    assert mu_s.shape == (B, NUM_FEATURES)
    assert jnp.allclose(mu_s, mu_ref_s, atol=2e-2, rtol=2e-2)
    assert jnp.allclose(recon_s, recon_ref_s, atol=3e-2, rtol=3e-2)
    assert bool(jnp.all(jnp.isfinite(recon_s)))
    assert bool(jnp.all((recon_s >= -1e-3) & (recon_s <= 1.0 + 1e-3)))

    print("KERNEL_OK")
</pallas_src>

<mosaic_0001>
module attributes {stable_mosaic.version = 11 : i64} {
  func.func @_vae_hard_kernel(%arg0: i32, %arg1: memref<128x128xbf16, #tpu.memory_space<vmem>>, %arg2: memref<128x128xbf16, #tpu.memory_space<vmem>>, %arg3: memref<128x128xbf16, #tpu.memory_space<vmem>>, %arg4: memref<128x128xbf16, #tpu.memory_space<vmem>>, %arg5: memref<128x128xbf16, #tpu.memory_space<vmem>>, %arg6: memref<4x128xf32, #tpu.memory_space<vmem>>, %arg7: memref<128x128xf32, #tpu.memory_space<vmem>>) attributes {dimension_semantics = [#tpu.dimension_semantics<parallel>], iteration_bounds = array<i64: 2>, scalar_prefetch = 0 : i64, scratch_operands = 0 : i64, tpu.core_type = #tpu.core_type<tc>, window_params = [{transform_indices = @transform_0, window_bounds = array<i64: 128, 128>}, {pipeline_mode = #tpu.pipeline_mode<synchronous>, transform_indices = @transform_1, window_bounds = array<i64: 128, 128>}, {pipeline_mode = #tpu.pipeline_mode<synchronous>, transform_indices = @transform_2, window_bounds = array<i64: 128, 128>}, {pipeline_mode = #tpu.pipeline_mode<synchronous>, transform_indices = @transform_3, window_bounds = array<i64: 128, 128>}, {pipeline_mode = #tpu.pipeline_mode<synchronous>, transform_indices = @transform_4, window_bounds = array<i64: 128, 128>}, {pipeline_mode = #tpu.pipeline_mode<synchronous>, transform_indices = @transform_5, window_bounds = array<i64: 4, 128>}, {transform_indices = @transform_6, window_bounds = array<i64: 128, 128>}]} {
    %c0 = arith.constant 0 : index
    %c0_0 = arith.constant 0 : index
    %0 = vector.load %arg1[%c0, %c0_0] : memref<128x128xbf16, #tpu.memory_space<vmem>>, vector<128x128xbf16>
    %c0_1 = arith.constant 0 : index
    %c0_2 = arith.constant 0 : index
    %1 = vector.load %arg2[%c0_1, %c0_2] : memref<128x128xbf16, #tpu.memory_space<vmem>>, vector<128x128xbf16>
    %cst = arith.constant dense<0.000000e+00> : vector<128x128xf32>
    %2 = tpu.matmul %0, %1, %cst {dimension_numbers = #tpu.dot_dimension_numbers<[1], [0], [0], [1], [0, 0, 1, 1], [], []>} : vector<128x128xbf16>, vector<128x128xbf16>, vector<128x128xf32> -> vector<128x128xf32>
    %c0_3 = arith.constant 0 : index
    %c0_4 = arith.constant 0 : index
    %3 = vector.load %arg6[%c0_3, %c0_4] : memref<4x128xf32, #tpu.memory_space<vmem>>, vector<1x128xf32>
    %4 = vector.broadcast %3 : vector<1x128xf32> to vector<128x128xf32>
    %5 = arith.addf %2, %4 : vector<128x128xf32>
    %cst_5 = arith.constant 0.000000e+00 : f32
    %6 = vector.broadcast %cst_5 : f32 to vector<128x128xf32>
    %7 = arith.maximumf %5, %6 : vector<128x128xf32>
    %8 = arith.truncf %7 : vector<128x128xf32> to vector<128x128xbf16>
    %c0_6 = arith.constant 0 : index
    %c0_7 = arith.constant 0 : index
    %9 = vector.load %arg3[%c0_6, %c0_7] : memref<128x128xbf16, #tpu.memory_space<vmem>>, vector<128x128xbf16>
    %cst_8 = arith.constant dense<0.000000e+00> : vector<128x128xf32>
    %10 = tpu.matmul %8, %9, %cst_8 {dimension_numbers = #tpu.dot_dimension_numbers<[1], [0], [0], [1], [0, 0, 1, 1], [], []>} : vector<128x128xbf16>, vector<128x128xbf16>, vector<128x128xf32> -> vector<128x128xf32>
    %c1 = arith.constant 1 : index
    %c0_9 = arith.constant 0 : index
    %11 = vector.load %arg6[%c1, %c0_9] : memref<4x128xf32, #tpu.memory_space<vmem>>, vector<1x128xf32>
    %12 = vector.broadcast %11 : vector<1x128xf32> to vector<128x128xf32>
    %13 = arith.addf %10, %12 : vector<128x128xf32>
    %cst_10 = arith.constant 0.000000e+00 : f32
    %14 = vector.broadcast %cst_10 : f32 to vector<128x128xf32>
    %15 = arith.subf %14, %13 : vector<128x128xf32>
    %16 = math.exp %15 : vector<128x128xf32>
    %cst_11 = arith.constant 1.000000e+00 : f32
    %17 = vector.broadcast %cst_11 : f32 to vector<128x128xf32>
    %18 = arith.addf %17, %16 : vector<128x128xf32>
    %19 = tpu.reciprocal %18 {approx = true} : vector<128x128xf32> -> vector<128x128xf32>
    %c0_12 = arith.constant 0 : index
    %c0_13 = arith.constant 0 : index
    %20 = vector.load %arg4[%c0_12, %c0_13] : memref<128x128xbf16, #tpu.memory_space<vmem>>, vector<128x128xbf16>
    %21 = arith.extf %20 : vector<128x128xbf16> to vector<128x128xf32>
    %cst_14 = arith.constant dense<0.000000e+00> : vector<128xf32>
    %22 = vector.multi_reduction <add>, %21, %cst_14 [0] : vector<128x128xf32> to vector<128xf32>
    %23 = vector.shape_cast %22 : vector<128xf32> to vector<1x128xf32>
    %c2 = arith.constant 2 : index
    %c0_15 = arith.constant 0 : index
    %24 = vector.load %arg6[%c2, %c0_15] : memref<4x128xf32, #tpu.memory_space<vmem>>, vector<1x128xf32>
    %25 = arith.addf %23, %24 : vector<1x128xf32>
    %cst_16 = arith.constant 0.000000e+00 : f32
    %26 = vector.broadcast %cst_16 : f32 to vector<1x128xf32>
    %27 = arith.maximumf %25, %26 : vector<1x128xf32>
    %28 = arith.truncf %27 : vector<1x128xf32> to vector<1x128xbf16>
    %c0_17 = arith.constant 0 : index
    %c0_18 = arith.constant 0 : index
    %29 = vector.load %arg5[%c0_17, %c0_18] : memref<128x128xbf16, #tpu.memory_space<vmem>>, vector<128x128xbf16>
    %cst_19 = arith.constant dense<0.000000e+00> : vector<1x128xf32>
    %30 = tpu.matmul %28, %29, %cst_19 {dimension_numbers = #tpu.dot_dimension_numbers<[1], [0], [0], [1], [0, 0, 1, 1], [], []>} : vector<1x128xbf16>, vector<128x128xbf16>, vector<1x128xf32> -> vector<1x128xf32>
    %c3 = arith.constant 3 : index
    %c0_20 = arith.constant 0 : index
    %31 = vector.load %arg6[%c3, %c0_20] : memref<4x128xf32, #tpu.memory_space<vmem>>, vector<1x128xf32>
    %32 = arith.addf %30, %31 : vector<1x128xf32>
    %cst_21 = arith.constant 0.000000e+00 : f32
    %33 = vector.broadcast %cst_21 : f32 to vector<1x128xf32>
    %34 = arith.subf %33, %32 : vector<1x128xf32>
    %35 = math.exp %34 : vector<1x128xf32>
    %cst_22 = arith.constant 1.000000e+00 : f32
    %36 = vector.broadcast %cst_22 : f32 to vector<1x128xf32>
    %37 = arith.addf %36, %35 : vector<1x128xf32>
    %38 = tpu.reciprocal %37 {approx = true} : vector<1x128xf32> -> vector<1x128xf32>
    %39 = vector.shape_cast %38 : vector<1x128xf32> to vector<1x128xf32>
    %40 = vector.broadcast %39 : vector<1x128xf32> to vector<128x128xf32>
    %41 = vector.extract_strided_slice %40 {offsets = [0, 0], sizes = [128, 112], strides = [1, 1]} : vector<128x128xf32> to vector<128x112xf32>
    %42 = vector.extract_strided_slice %19 {offsets = [0, 0], sizes = [128, 16], strides = [1, 1]} : vector<128x128xf32> to vector<128x16xf32>
    %43 = tpu.concatenate %41, %42 in 1 : vector<128x112xf32>, vector<128x16xf32> -> vector<128x128xf32>
    %c0_23 = arith.constant 0 : index
    %c0_24 = arith.constant 0 : index
    %44 = vector.load %arg7[%c0_23, %c0_24] : memref<128x128xf32, #tpu.memory_space<vmem>>, vector<128x128xf32>
    tpu.vector_store %arg7[%c0_23, %c0_24], %43 {strides = array<i32>} : memref<128x128xf32, #tpu.memory_space<vmem>>, vector<128x128xf32>,
    return
  }
  func.func @transform_0(%arg0: i32) -> (i32, i32) {
    %c0_i32 = arith.constant 0 : i32
    %c0_i32_0 = arith.constant 0 : i32
    return %arg0, %c0_i32 : i32, i32
  }
  func.func @transform_1(%arg0: i32) -> (i32, i32) {
    %c0_i32 = arith.constant 0 : i32
    %c0_i32_0 = arith.constant 0 : i32
    %c0_i32_1 = arith.constant 0 : i32
    return %c0_i32, %c0_i32_0 : i32, i32
  }
  func.func @transform_2(%arg0: i32) -> (i32, i32) {
    %c0_i32 = arith.constant 0 : i32
    %c0_i32_0 = arith.constant 0 : i32
    %c0_i32_1 = arith.constant 0 : i32
    return %c0_i32, %c0_i32_0 : i32, i32
  }
  func.func @transform_3(%arg0: i32) -> (i32, i32) {
    %c0_i32 = arith.constant 0 : i32
    %c0_i32_0 = arith.constant 0 : i32
    %c0_i32_1 = arith.constant 0 : i32
    return %c0_i32, %c0_i32_0 : i32, i32
  }
  func.func @transform_4(%arg0: i32) -> (i32, i32) {
    %c0_i32 = arith.constant 0 : i32
    %c0_i32_0 = arith.constant 0 : i32
    %c0_i32_1 = arith.constant 0 : i32
    return %c0_i32, %c0_i32_0 : i32, i32
  }
  func.func @transform_5(%arg0: i32) -> (i32, i32) {
    %c0_i32 = arith.constant 0 : i32
    %c0_i32_0 = arith.constant 0 : i32
    %c0_i32_1 = arith.constant 0 : i32
    return %c0_i32, %c0_i32_0 : i32, i32
  }
  func.func @transform_6(%arg0: i32) -> (i32, i32) {
    %c0_i32 = arith.constant 0 : i32
    %c0_i32_0 = arith.constant 0 : i32
    return %arg0, %c0_i32 : i32, i32
  }
}

</mosaic_0001>

<bundles_post_ra>
// kernel: relaxed_bernoulli_vae_forward.1
= control target key start
LH: loop header
LB: loop body
LE: loop exit
PB: predicated region body
PF: predicated region fallthrough
CT: control target
= control target key end

     0   :  { %s1446_s21 = smov 0   ;;  %s1656_s0 = inlined_call_operand.vmem [shape: bf16[256,128], index: 0, kind: input, shape index: {}]   ;;  %s1657_s1 = inlined_call_operand.vmem [shape: bf16[128,128], index: 1, kind: input, shape index: {}]   ;;  %s1658_s2 = inlined_call_operand.vmem [shape: bf16[128,128], index: 2, kind: input, shape index: {}]   ;;  %s1659_s3 = inlined_call_operand.vmem [shape: bf16[128,128], index: 3, kind: input, shape index: {}]   ;;  %s1660_s4 = inlined_call_operand.vmem [shape: bf16[128,128], index: 4, kind: input, shape index: {}]   ;;  %s1661_s5 = inlined_call_operand.vmem [shape: f32[4,128], index: 5, kind: input, shape index: {}]   ;;  %s1662_s6 = inlined_call_operand.vmem [shape: f32[256,128], index: 6, kind: output, shape index: {}]  }
   0x1 LB: > { %s1080_s22 = sadd.s32 4294967295, %s1406_s21   ;;  %p1084_p0 = scmp.ge.s32.totalorder %s1406_s21, 1  ;;  %s1406_s21 = sphi %s1446_s21, %s16_s21  }
   0x2   : > { %p213_p1 = scmp.lt.s32.totalorder %s1406_s21, 3 }
   0x4   : > { %p214_p2 = pnand %p1084_p0, %p213_p1 }
   0x5   : > { %s1085_s25 = sshll.u32 (!%p214_p2), %s1080_s22, 4  ;;  %s1410_s8 = smov (!%p214_p2), 112  }
   0x6   : > { %217 = sbr.rel (%p214_p2) target bundleno = 631 (0x277), region = 44  ;;  %p244_p3 = scmp.lt.s32.totalorder (!%p214_p2), %s1085_s25, 31 }
   0xb   : > { %v1300_v0 = vld [vmem:[%s1657_s1 + $0x38] sm:$0xff]   ;;  %v1301_v1 = vld [vmem:[%s1657_s1 + $0x30] sm:$0xff]   ;;  %s1664_s25 = smov (!%p244_p3, %s1085_s25), 31  ;;  %v1302_v2 = vld [vmem:[%s1657_s1 + $0x28] sm:$0xff]   ;;  %v1408_v25 = vmov 0.0   ;;  %vm1409_vm0 = vmmov 0  }
   0xc   : > { %1205 = vmatprep.subr.bf16.mxu0 %v1300_v0  ;;  %s1086_s30 = sshll.u32 %s1664_s25, 2  ;;  %v1303_v3 = vld [vmem:[%s1657_s1 + $0x20] sm:$0xff]   ;;  %v1304_v5 = vld [vmem:[%s1657_s1 + $0x18] sm:$0xff]   ;;  %v1305_v6 = vld [vmem:[%s1657_s1 + $0x10] sm:$0xff]   ;;  %s1088_s12 = sshll.u32 %s1664_s25, 3  ;;  %vm991_vm1 = vcmask 916480  }
   0xd   : > { %1206 = vmatpush3.bf16.msra.mxu0 %v1300_v0  ;;  %s1469_s9 = scalar_lea.vmem %s1656_s0, %s1086_s30  ;;  %v1316_v7 = vld [vmem:[%s1658_s2 + $0x38] sm:$0xff]   ;;  %v1317_v8 = vld [vmem:[%s1658_s2 + $0x30] sm:$0xff]   ;;  %v1306_v9 = vld [vmem:[%s1657_s1 + $0x8] sm:$0xff]  }
   0xe   : > { %1207 = vmatprep.subr.bf16.mxu0 %v1301_v1  ;;  %v1308_v4 = vld [vmem:[%s1469_s9] sm:$0xff]   ;;  %1237 = vmatprep.subr.bf16.mxu1 %v1316_v7  ;;  %v1318_v10 = vld [vmem:[%s1658_s2 + $0x28] sm:$0xff]   ;;  %v1320_v13 = vld [vmem:[%s1658_s2 + $0x18] sm:$0xff]  }
   0xf   : > { %1221 = vmatprep.mubr.bf16.mxu0 %v1308_v4  ;;  %1238 = vmatpush3.bf16.msra.mxu1 %v1316_v7  ;;  %v1307_v11 = vld [vmem:[%s1657_s1] sm:$0xff]   ;;  %v1309_v14 = vld [vmem:[%s1469_s9 + $0x8] sm:$0xff]   ;;  %v1310_v15 = vld [vmem:[%s1469_s9 + $0x10] sm:$0xff]  }
  0x10   : > { %1239 = vmatprep.subr.bf16.mxu1 %v1317_v8  ;;  %v1319_v12 = vld [vmem:[%s1658_s2 + $0x20] sm:$0xff]   ;;  %v1311_v16 = vld [vmem:[%s1469_s9 + $0x18] sm:$0xff]   ;;  %v1313_v18 = vld [vmem:[%s1469_s9 + $0x28] sm:$0xff]  }
  0x11   : > { %1208 = vmatpush3.bf16.msra.mxu0 %v1301_v1  ;;  %v1312_v17 = vld [vmem:[%s1469_s9 + $0x20] sm:$0xff]   ;;  %v1314_v19 = vld [vmem:[%s1469_s9 + $0x30] sm:$0xff]   ;;  %v1315_v20 = vld [vmem:[%s1469_s9 + $0x38] sm:$0xff]   ;;  %s1619_s9 = scalar_lea.vmem %s1662_s6, %s1088_s12 }
  0x12   : > { %1209 = vmatprep.subr.bf16.mxu0 %v1302_v2  ;;  %v1321_v21 = vld [vmem:[%s1658_s2 + $0x10] sm:$0xff]   ;;  %v1322_v22 = vld [vmem:[%s1658_s2 + $0x8] sm:$0xff]   ;;  %v1323_v23 = vld [vmem:[%s1658_s2] sm:$0xff]  }
  0x13   : > { %1240 = vmatpush3.bf16.msra.mxu1 %v1317_v8  ;;  %v1324_v24 = vld [vmem:[%s1660_s4 + $0x38] sm:$0xff]   ;;  %v1325_v26 = vld [vmem:[%s1660_s4 + $0x30] sm:$0xff]   ;;  %v1126_v27 = vld [vmem:[%s1659_s3] sm:$0xff]  }
  0x14   : > { %1241 = vmatprep.subr.bf16.mxu1 %v1318_v10  ;;  %v1127_v28 = vunpack.c.l.bf16 %v1126_v27  ;;  %v1128_v29 = vunpack.c.h.bf16 %v1126_v27  ;;  %v1157_v30 = vld [vmem:[%s1659_s3 + $0x8] sm:$0xff]   ;;  %v1158_v33 = vld [vmem:[%s1659_s3 + $0x10] sm:$0xff]   ;;  %v1327_v38 = vld [vmem:[%s1660_s4 + $0x20] sm:$0xff]  }
  0x15   : > { %1210 = vmatpush3.bf16.msra.mxu0 %v1302_v2  ;;  %v1131_v31 = vunpack.c.l.bf16 %v1157_v30  ;;  %v1326_v32 = vld [vmem:[%s1660_s4 + $0x28] sm:$0xff]   ;;  %v1132_v34 = vunpack.c.h.bf16 %v1157_v30  ;;  %v1135_v36 = vunpack.c.l.bf16 %v1158_v33  ;;  %v1159_v39 = vld [vmem:[%s1659_s3 + $0x18] sm:$0xff]   ;;  %v1136_v40 = vunpack.c.h.bf16 %v1158_v33  ;;  %v1160_v45 = vld [vmem:[%s1659_s3 + $0x20] sm:$0xff]  }
  0x16   : > { %1211 = vmatprep.subr.bf16.mxu0 %v1303_v3  ;;  %v788_v35 = vadd.f32 %v1128_v29, %v1127_v28  ;;  %v1139_v42 = vunpack.c.l.bf16 %v1159_v39  ;;  %v1328_v44 = vld [vmem:[%s1660_s4 + $0x18] sm:$0xff]   ;;  %v1140_v46 = vunpack.c.h.bf16 %v1159_v39  ;;  %v1143_v48 = vunpack.c.l.bf16 %v1160_v45  ;;  %v1329_v50 = vld [vmem:[%s1660_s4 + $0x10] sm:$0xff]   ;;  %v1161_v51 = vld [vmem:[%s1659_s3 + $0x28] sm:$0xff]  }
  0x17   : > { %1242 = vmatpush3.bf16.msra.mxu1 %v1318_v10  ;;  %v1144_v52 = vunpack.c.h.bf16 %v1160_v45  ;;  %v1147_v54 = vunpack.c.l.bf16 %v1161_v51  ;;  %v1330_v56 = vld [vmem:[%s1660_s4 + $0x8] sm:$0xff]   ;;  %v1162_v57 = vld [vmem:[%s1659_s3 + $0x30] sm:$0xff]   ;;  %v1148_v58 = vunpack.c.h.bf16 %v1161_v51  ;;  %v1331_v62 = vld [vmem:[%s1660_s4] sm:$0xff]  }
  0x18   : > { %1243 = vmatprep.subr.bf16.mxu1 %v1319_v12  ;;  %v789_v37 = vadd.f32 %v1131_v31, %v788_v35  ;;  %v1151_v60 = vunpack.c.l.bf16 %v1162_v57  ;;  %v1163_v63 = vld [vmem:[%s1659_s3 + $0x38] sm:$0xff]   ;;  %v1152_v0 = vunpack.c.h.bf16 %v1162_v57 }
  0x19   : > { %1212 = vmatpush3.bf16.msra.mxu0 %v1303_v3  ;;  %v1155_v2 = vunpack.c.l.bf16 %v1163_v63  ;;  %v1156_v4 = vunpack.c.h.bf16 %v1163_v63 }
  0x1a   : > { %1213 = vmatprep.subr.bf16.mxu0 %v1304_v5  ;;  %v790_v41 = vadd.f32 %v1132_v34, %v789_v37 }
  0x1b   : > { %1244 = vmatpush3.bf16.msra.mxu1 %v1319_v12 }
  0x1c   : > { %1245 = vmatprep.subr.bf16.mxu1 %v1320_v13  ;;  %v791_v43 = vadd.f32 %v1135_v36, %v790_v41 }
  0x1d   : > { %1214 = vmatpush3.bf16.msra.mxu0 %v1304_v5 }
  0x1e   : > { %1215 = vmatprep.subr.bf16.mxu0 %v1305_v6  ;;  %v792_v47 = vadd.f32 %v1136_v40, %v791_v43 }
  0x1f   : > { %1246 = vmatpush3.bf16.msra.mxu1 %v1320_v13  ;;  %v809_v13 = vld [vmem:[%s1661_s5 + $0x2] sm:$0x1] }
  0x20   : > { %1247 = vmatprep.subr.bf16.mxu1 %v1321_v21  ;;  %v793_v49 = vadd.f32 %v1139_v42, %v792_v47 }
  0x21   : > { %1216 = vmatpush3.bf16.msra.mxu0 %v1305_v6 }
  0x22   : > { %1217 = vmatprep.subr.bf16.mxu0 %v1306_v9  ;;  %v794_v53 = vadd.f32 %v1140_v46, %v793_v49 }
  0x23   : > { %1248 = vmatpush3.bf16.msra.mxu1 %v1321_v21 }
  0x24   : > { %1249 = vmatprep.subr.bf16.mxu1 %v1322_v22  ;;  %v795_v55 = vadd.f32 %v1143_v48, %v794_v53 }
  0x25   : > { %1218 = vmatpush3.bf16.msra.mxu0 %v1306_v9 }
  0x26   : > { %1219 = vmatprep.subr.bf16.mxu0 %v1307_v11  ;;  %v796_v59 = vadd.f32 %v1144_v52, %v795_v55 }
  0x27   : > { %1250 = vmatpush3.bf16.msra.mxu1 %v1322_v22 }
  0x28   : > { %1251 = vmatprep.subr.bf16.mxu1 %v1323_v23  ;;  %v797_v61 = vadd.f32 %v1147_v54, %v796_v59 }
  0x29   : > { %1220 = vmatpush3.bf16.msra.mxu0 %v1307_v11 }
  0x2a   : > { %1269 = vmatprep.subr.bf16.mxu0 %v1408_v25  ;;  %v798_v1 = vadd.f32 %v1148_v58, %v797_v61 }
  0x2b   : > { %1252 = vmatpush3.bf16.msra.mxu1 %v1323_v23 }
  0x2c   : > { %1222 = vmatmul.mubr.bf16.vlgmr.msra.gmra.mxu0 %v1309_v14  ;;  %v799_v3 = vadd.f32 %v1151_v60, %v798_v1 }
  0x2d   : > { %1225 = vmatprep.mubr.bf16.mxu0 %v1310_v15  ;;  %1270 = vmatpush3.bf16.msra.mxu0 %v1324_v24 }
  0x2e   : > { %1271 = vmatprep.subr.bf16.mxu0 %v1408_v25  ;;  %v800_v5 = vadd.f32 %v1152_v0, %v799_v3 }
  0x30   : > { %v801_v6 = vadd.f32 %v1155_v2, %v800_v5 }
  0x31   : > { %1272 = vmatpush3.bf16.msra.mxu0 %v1325_v26 }
  0x32   : > { %1273 = vmatprep.subr.bf16.mxu0 %v1408_v25  ;;  %v802_v7 = vadd.f32 %v1156_v4, %v801_v6 }
  0x34   : > { %1226 = vmatmul.mubr.bf16.gmra.mxu0 %v1311_v16  ;;  %v803_v8 = vrot.slane %v802_v7, 4 }
  0x35   : > { %1229 = vmatprep.mubr.bf16.mxu0 %v1312_v17  ;;  %1274 = vmatpush3.bf16.msra.mxu0 %v1326_v32 }
  0x36   : > { %1275 = vmatprep.subr.bf16.mxu0 %v1408_v25  ;;  %v804_v9 = vadd.f32 %v803_v8, %v802_v7 }
  0x38   : > { %v805_v10 = vrot.slane %v804_v9, 2 }
  0x39   : > { %1276 = vmatpush3.bf16.msra.mxu0 %v1327_v38 }
  0x3a   : > { %1277 = vmatprep.subr.bf16.mxu0 %v1408_v25  ;;  %v806_v11 = vadd.f32 %v805_v10, %v804_v9 }
  0x3c   : > { %1230 = vmatmul.mubr.bf16.gmra.mxu0 %v1313_v18  ;;  %v807_v12 = vrot.slane %v806_v11, 1 }
  0x3d   : > { %1233 = vmatprep.mubr.bf16.mxu0 %v1314_v19  ;;  %1278 = vmatpush3.bf16.msra.mxu0 %v1328_v44 }
  0x3e   : > { %1279 = vmatprep.subr.bf16.mxu0 %v1408_v25  ;;  %v808_v14 = vadd.f32 %v807_v12, %v806_v11 }
  0x40   : > { %v810_v15 = vadd.f32 %v809_v13, %v808_v14 }
  0x41   : > { %1280 = vmatpush3.bf16.msra.mxu0 %v1329_v50 }
  0x42   : > { %1281 = vmatprep.subr.bf16.mxu0 %v1408_v25  ;;  %v811_v16 = vmax.f32 %v810_v15, 0.0  ;;  %v1577_v15 = vld [vmem:[%s1661_s5 + $0x1] ss:$0 sm:$0xff] }
  0x44   : > { %1234 = vmatmul.mubr.bf16.gmra.mxu0 %v1315_v20  ;;  %v812_v17 = vpack.c.bf16 %v811_v16, %v811_v16  ;;  %v1089_v20 = vld [vmem:[%s1661_s5] ss:$0 sm:$0xff] }
  0x45   : > { %1285 = vmatprep.mubr.msk.bf16.mxu0 %vm1409_vm0, %v1408_v25  ;;  %1282 = vmatpush3.bf16.msra.mxu0 %v1330_v56 }
  0x46   : > { %1283 = vmatprep.subr.bf16.mxu0 %v1408_v25 }
  0x49   : > { %1284 = vmatpush3.bf16.msra.mxu0 %v1331_v62 }
  0x4c   : > { %1286 = vmatmul.mubr.bf16.vlgmr.msra.gmra.mxu0 %v812_v17 }
  0xec   : > { %v1223_v18 = vpop.f32.mrf.mxu0 }
  0xed   : > { %v432_v24 = vadd.f32 %v1223_v18, %v1089_v20 }
  0xee   : > { %v423_v19 = vpop.f32.mrf.mxu0 }
  0xef   : > { %v424_v22 = vadd.f32 %v1089_v20, %v423_v19  ;;  %v488_v31 = vmax.f32 %v432_v24, 0.0 }
  0xf0   : > { %v1224_v21 = vpop.f32.mrf.mxu0 }
  0xf1   : > { %v435_v23 = vadd.f32 %v1224_v21, %v1089_v20  ;;  %v486_v29 = vmax.f32 %v424_v22, 0.0 }
  0xf2   : > { %v426_v25 = vpop.f32.mrf.mxu0 }
  0xf3   : > { %v427_v26 = vadd.f32 %v1089_v20, %v426_v25  ;;  %v489_v27 = vmax.f32 %v435_v23, 0.0 }
  0xf4   : > { %v1227_v28 = vpop.f32.mrf.mxu0 }
  0xf5   : > { %v487_v30 = vmax.f32 %v427_v26, 0.0  ;;  %v503_v34 = vpack.c.bf16 %v489_v27, %v488_v31  ;;  %v448_v38 = vadd.f32 %v1227_v28, %v1089_v20 }
  0xf6   : > { %v439_v32 = vpop.f32.mrf.mxu0 }
  0xf7   : > { %v502_v33 = vpack.c.bf16 %v487_v30, %v486_v29  ;;  %v440_v36 = vadd.f32 %v1089_v20, %v439_v32  ;;  %v492_v45 = vmax.f32 %v448_v38, 0.0 }
  0xf8   : > { %v1228_v35 = vpop.f32.mrf.mxu0 }
  0xf9   : > { %v451_v37 = vadd.f32 %v1228_v35, %v1089_v20  ;;  %1253 = vmatprep.mubr.bf16.mxu1 %v502_v33  ;;  %v490_v43 = vmax.f32 %v440_v36, 0.0 }
  0xfa   : > { %v442_v39 = vpop.f32.mrf.mxu0  ;;  %1254 = vmatmul.mubr.bf16.vlgmr.msra.gmra.mxu1 %v503_v34 }
  0xfb   : > { %v443_v40 = vadd.f32 %v1089_v20, %v442_v39  ;;  %v493_v41 = vmax.f32 %v451_v37, 0.0 }
  0xfc   : > { %v1231_v42 = vpop.f32.mrf.mxu0 }
  0xfd   : > { %v491_v44 = vmax.f32 %v443_v40, 0.0  ;;  %v505_v48 = vpack.c.bf16 %v493_v41, %v492_v45  ;;  %v464_v52 = vadd.f32 %v1231_v42, %v1089_v20 }
  0xfe   : > { %v455_v46 = vpop.f32.mrf.mxu0 }
  0xff   : > { %v504_v47 = vpack.c.bf16 %v491_v44, %v490_v43  ;;  %v456_v50 = vadd.f32 %v1089_v20, %v455_v46  ;;  %v496_v59 = vmax.f32 %v464_v52, 0.0 }
 0x100   : > { %v1232_v49 = vpop.f32.mrf.mxu0 }
 0x101   : > { %v467_v51 = vadd.f32 %v1232_v49, %v1089_v20  ;;  %1257 = vmatprep.mubr.bf16.mxu1 %v504_v47  ;;  %v494_v57 = vmax.f32 %v456_v50, 0.0 }
 0x102   : > { %v458_v53 = vpop.f32.mrf.mxu0  ;;  %1258 = vmatmul.mubr.bf16.gmra.mxu1 %v505_v48 }
 0x103   : > { %v459_v54 = vadd.f32 %v1089_v20, %v458_v53  ;;  %v497_v55 = vmax.f32 %v467_v51, 0.0 }
 0x104   : > { %v1235_v56 = vpop.f32.mrf.mxu0 }
 0x105   : > { %v495_v58 = vmax.f32 %v459_v54, 0.0  ;;  %v507_v62 = vpack.c.bf16 %v497_v55, %v496_v59  ;;  %v480_v2 = vadd.f32 %v1235_v56, %v1089_v20 }
 0x106   : > { %v471_v60 = vpop.f32.mrf.mxu0 }
 0x107   : > { %v506_v61 = vpack.c.bf16 %v495_v58, %v494_v57  ;;  %v472_v0 = vadd.f32 %v1089_v20, %v471_v60  ;;  %v500_v8 = vmax.f32 %v480_v2, 0.0 }
 0x108   : > { %v1236_v63 = vpop.f32.mrf.mxu0 }
 0x109   : > { %v483_v1 = vadd.f32 %v1236_v63, %v1089_v20  ;;  %1261 = vmatprep.mubr.bf16.mxu1 %v506_v61  ;;  %v498_v6 = vmax.f32 %v472_v0, 0.0 }
 0x10a   : > { %v474_v3 = vpop.f32.mrf.mxu0  ;;  %1262 = vmatmul.mubr.bf16.gmra.mxu1 %v507_v62 }
 0x10b   : > { %v475_v4 = vadd.f32 %v1089_v20, %v474_v3  ;;  %v501_v5 = vmax.f32 %v483_v1, 0.0 }
 0x10c   : > { %v1572_v11 = vpop.f32.mrf.mxu0 }
 0x10d   : > { %v499_v7 = vmax.f32 %v475_v4, 0.0  ;;  %v509_v10 = vpack.c.bf16 %v501_v5, %v500_v8 }
 0x10e   : > { %v1287_v12 = vpop.f32.mrf.mxu0 }
 0x10f   : > { %v508_v9 = vpack.c.bf16 %v499_v7, %v498_v6 }
 0x110   : > { %v915_v13 = vpop.f32.mrf.mxu0 }
 0x111   : > { %1265 = vmatprep.mubr.bf16.mxu1 %v508_v9 }
 0x112   : > { %1266 = vmatmul.mubr.bf16.gmra.mxu1 %v509_v10  ;;  %v1288_v14 = vpop.f32.mrf.mxu0 }
 0x1ba   : > { %v1255_v16 = vpop.f32.mrf.mxu1 }
 0x1bb   : > { %v622_v17 = vadd.f32 %v1255_v16, %v1577_v15 }
 0x1bc   : > { %v613_v18 = vpop.f32.mrf.mxu1 }
 0x1bd   : > { %v678_v19 = vsub.f32 0.0, %v622_v17  ;;  %v614_v20 = vadd.f32 %v1577_v15, %v613_v18 }
 0x1be   : > { %v1256_v21 = vpop.f32.mrf.mxu1 }
 0x1bf   : > { %v696_v22 = vmul.f32 1.442695, %v678_v19  ;;  %v676_v23 = vsub.f32 0.0, %v614_v20  ;;  %v625_v24 = vadd.f32 %v1256_v21, %v1577_v15 }
 0x1c0   : > { %v616_v25 = vpop.f32.mrf.mxu1 }
 0x1c1   : > { %1332 = vpow2.f32 %v696_v22  ;;  %v692_v26 = vmul.f32 1.442695, %v676_v23  ;;  %v679_v27 = vsub.f32 0.0, %v625_v24  ;;  %v617_v28 = vadd.f32 %v1577_v15, %v616_v25 }
 0x1c2   : > { %v1259_v29 = vpop.f32.mrf.mxu1 }
 0x1c3   : > { %1334 = vpow2.f32 %v692_v26  ;;  %v698_v30 = vmul.f32 1.442695, %v679_v27  ;;  %v677_v31 = vsub.f32 0.0, %v617_v28  ;;  %v638_v32 = vadd.f32 %v1259_v29, %v1577_v15 }
 0x1c4   : > { %v629_v33 = vpop.f32.mrf.mxu1 }
 0x1c5   : > { %1336 = vpow2.f32 %v698_v30  ;;  %v694_v34 = vmul.f32 1.442695, %v677_v31  ;;  %v682_v35 = vsub.f32 0.0, %v638_v32  ;;  %v630_v36 = vadd.f32 %v1577_v15, %v629_v33 }
 0x1c6   : > { %v1260_v37 = vpop.f32.mrf.mxu1 }
 0x1c7   : > { %1338 = vpow2.f32 %v694_v34  ;;  %v704_v38 = vmul.f32 1.442695, %v682_v35  ;;  %v680_v39 = vsub.f32 0.0, %v630_v36  ;;  %v641_v40 = vadd.f32 %v1260_v37, %v1577_v15 }
 0x1c8   : > { %v632_v41 = vpop.f32.mrf.mxu1 }
 0x1c9   : > { %1340 = vpow2.f32 %v704_v38  ;;  %v700_v42 = vmul.f32 1.442695, %v680_v39  ;;  %v683_v43 = vsub.f32 0.0, %v641_v40  ;;  %v633_v44 = vadd.f32 %v1577_v15, %v632_v41 }
 0x1ca   : > { %v1263_v45 = vpop.f32.mrf.mxu1 }
 0x1cb   : > { %1342 = vpow2.f32 %v700_v42  ;;  %v706_v46 = vmul.f32 1.442695, %v683_v43  ;;  %v681_v47 = vsub.f32 0.0, %v633_v44  ;;  %v654_v48 = vadd.f32 %v1263_v45, %v1577_v15 }
 0x1cc   : > { %v645_v49 = vpop.f32.mrf.mxu1 }
 0x1cd   : > { %1344 = vpow2.f32 %v706_v46  ;;  %v702_v50 = vmul.f32 1.442695, %v681_v47  ;;  %v686_v51 = vsub.f32 0.0, %v654_v48  ;;  %v646_v52 = vadd.f32 %v1577_v15, %v645_v49 }
 0x1ce   : > { %v1333_v53 = vpop.eup %1332  ;;  %v1264_v54 = vpop.f32.mrf.mxu1 }
 0x1cf   : > { %v726_v55 = vadd.f32 1.0, %v1333_v53  ;;  %1346 = vpow2.f32 %v702_v50  ;;  %v712_v56 = vmul.f32 1.442695, %v686_v51  ;;  %v684_v57 = vsub.f32 0.0, %v646_v52 }
 0x1d0   : > { %v1335_v58 = vpop.eup %1334  ;;  %v657_v59 = vadd.f32 %v1264_v54, %v1577_v15  ;;  %v648_v60 = vpop.f32.mrf.mxu1 }
 0x1d1   : > { %1348 = vrcp.f32 %v726_v55  ;;  %v724_v61 = vadd.f32 1.0, %v1335_v58  ;;  %v708_v62 = vmul.f32 1.442695, %v684_v57  ;;  %v649_v63 = vadd.f32 %v1577_v15, %v648_v60 }
 0x1d2   : > { %v1337_v0 = vpop.eup %1336  ;;  %1350 = vpow2.f32 %v712_v56  ;;  %v687_v1 = vsub.f32 0.0, %v657_v59  ;;  %v1267_v2 = vpop.f32.mrf.mxu1 }
 0x1d3   : > { %1352 = vrcp.f32 %v724_v61  ;;  %v727_v3 = vadd.f32 1.0, %v1337_v0  ;;  %v685_v4 = vsub.f32 0.0, %v649_v63  ;;  %v670_v5 = vadd.f32 %v1267_v2, %v1577_v15 }
 0x1d4   : > { %v1339_v6 = vpop.eup %1338  ;;  %1354 = vpow2.f32 %v708_v62  ;;  %v714_v7 = vmul.f32 1.442695, %v687_v1  ;;  %v661_v8 = vpop.f32.mrf.mxu1  ;;  %v829_v1 = vld [vmem:[%s1661_s5 + $0x3] sm:$0x1] }
 0x1d5   : > { %1356 = vrcp.f32 %v727_v3  ;;  %v725_v9 = vadd.f32 1.0, %v1339_v6  ;;  %v710_v10 = vmul.f32 1.442695, %v685_v4  ;;  %v690_v12 = vsub.f32 0.0, %v670_v5 }
 0x1d6   : > { %v1341_v13 = vpop.eup %1340  ;;  %1358 = vpow2.f32 %v714_v7  ;;  %v662_v14 = vadd.f32 %v1577_v15, %v661_v8  ;;  %v1268_v16 = vpop.f32.mrf.mxu1  ;;  %v913_v2 = vadd.f32 %v1572_v11, %v829_v1  ;;  %v923_v7 = vlaneseq }
 0x1d7   : > { %1360 = vrcp.f32 %v725_v9  ;;  %v730_v17 = vadd.f32 1.0, %v1341_v13  ;;  %v720_v18 = vmul.f32 1.442695, %v690_v12  ;;  %v673_v19 = vadd.f32 %v1268_v16, %v1577_v15 }
 0x1d8   : > { %v1343_v20 = vpop.eup %1342  ;;  %1362 = vpow2.f32 %v710_v10  ;;  %v688_v21 = vsub.f32 0.0, %v662_v14  ;;  %v664_v22 = vpop.f32.mrf.mxu1  ;;  %v918_v3 = vsub.f32 0.0, %v913_v2  ;;  %v924_v8 = vshrl.u32 %v923_v7, 7 }
 0x1d9   : > { %v691_v23 = vsub.f32 0.0, %v673_v19  ;;  %v665_v24 = vadd.f32 %v1577_v15, %v664_v22  ;;  %1364 = vrcp.f32 %v730_v17  ;;  %v728_v26 = vadd.f32 1.0, %v1343_v20 }
 0x1da   : > { %v1345_v25 = vpop.eup %1344  ;;  %v716_v27 = vmul.f32 1.442695, %v688_v21  ;;  %1366 = vpow2.f32 %v720_v18  ;;  %v919_v4 = vmul.f32 1.442695, %v918_v3  ;;  %v925_v9 = vsub.s32 0, %v924_v8 }
 0x1db   : > { %v731_v28 = vadd.f32 1.0, %v1345_v25  ;;  %v722_v29 = vmul.f32 1.442695, %v691_v23  ;;  %v689_v30 = vsub.f32 0.0, %v665_v24 }
 0x1dc   : > { %v1347_v31 = vpop.eup %1346  ;;  %1368 = vpow2.f32 %v716_v27 }
 0x1dd   : > { %1370 = vrcp.f32 %v731_v28  ;;  %v729_v32 = vadd.f32 1.0, %v1347_v31  ;;  %v718_v33 = vmul.f32 1.442695, %v689_v30 }
 0x1de   : > { %v1349_v34 = vpop.eup %1348  ;;  %1372 = vrcp.f32 %v728_v26 }
 0x1df   : > { %v1351_v35 = vpop.eup %1350  ;;  %1374 = vpow2.f32 %v722_v29  ;;  %947 = vrot.lane.b32.xlu1 %v1349_v34, %s1410_s8 }
 0x1e0   : > { %v1353_v15 = vpop.eup %1352  ;;  %v734_v36 = vadd.f32 1.0, %v1351_v35  ;;  %1376 = vpow2.f32 %v718_v33 }
 0x1e1   : > { %v1355_v37 = vpop.eup %1354  ;;  %1378 = vrcp.f32 %v729_v32  ;;  %943 = vrot.lane.b32.xlu0 %v1353_v15, %s1410_s8 }
 0x1e2   : > { %v1357_v38 = vpop.eup %1356  ;;  %1380 = vrcp.f32 %v734_v36  ;;  %v732_v40 = vadd.f32 1.0, %v1355_v37 }
 0x1e3   : > { %v1359_v39 = vpop.eup %1358  ;;  %949 = vrot.lane.b32.xlu1 %v1357_v38, %s1410_s8 }
 0x1e4   : > { %v1361_v41 = vpop.eup %1360  ;;  %v735_v42 = vadd.f32 1.0, %v1359_v39 }
 0x1e5   : > { %v1363_v43 = vpop.eup %1362  ;;  %945 = vrot.lane.b32.xlu0 %v1361_v41, %s1410_s8 }
 0x1e6   : > { %1382 = vrcp.f32 %v735_v42  ;;  %v733_v44 = vadd.f32 1.0, %v1363_v43  ;;  %v1365_v45 = vpop.eup %1364 }
 0x1e7   : > { %1384 = vrcp.f32 %v732_v40  ;;  %v1367_v46 = vpop.eup %1366 }
 0x1e8   : > { %1386 = vrcp.f32 %v733_v44  ;;  %v738_v51 = vadd.f32 1.0, %v1367_v46 }
 0x1e9   : > { %v1369_v47 = vpop.eup %1368  ;;  %955 = vrot.lane.b32.xlu0 %v1365_v45, %s1410_s8 }
 0x1ea   : > { %v1371_v48 = vpop.eup %1370  ;;  %v736_v49 = vadd.f32 1.0, %v1369_v47 }
 0x1eb   : > { %v1373_v50 = vpop.eup %1372  ;;  %957 = vrot.lane.b32.xlu1 %v1371_v48, %s1410_s8 }
 0x1ec   : > { %v1375_v52 = vpop.eup %1374  ;;  %1388 = vrcp.f32 %v736_v49 }
 0x1ed   : > { %v1377_v53 = vpop.eup %1376  ;;  %951 = vrot.lane.b32.xlu0 %v1373_v50, %s1410_s8  ;;  %1390 = vrcp.f32 %v738_v51  ;;  %v739_v57 = vadd.f32 1.0, %v1375_v52 }
 0x1ee   : > { %v1379_v54 = vpop.eup %1378  ;;  %v737_v55 = vadd.f32 1.0, %v1377_v53 }
 0x1ef   : > { %953 = vrot.lane.b32.xlu1 %v1379_v54, %s1410_s8  ;;  %v1381_v56 = vpop.eup %1380 }
 0x1f0   : > { %1392 = vrcp.f32 %v737_v55 }
 0x1f1   : > { %963 = vrot.lane.b32.xlu0 %v1381_v56, %s1410_s8  ;;  %1394 = vrcp.f32 %v739_v57 }
 0x1f2   : > { %1396 = vpow2.f32 %v919_v4 }
 0x1f3   : > { %v1383_v58 = vpop.eup %1382 }
 0x1f4   : > { %v1385_v59 = vpop.eup %1384  ;;  %965 = vrot.lane.b32.xlu1 %v1383_v58, %s1410_s8 }
 0x1f5   : > { %959 = vrot.lane.b32.xlu0 %v1385_v59, %s1410_s8  ;;  %v1387_v60 = vpop.eup %1386 }
 0x1f8   : > { %961 = vrot.lane.b32.xlu1 %v1387_v60, %s1410_s8 }
 0x1f9   : > { %v1389_v61 = vpop.eup %1388 }
 0x1fa   : > { %967 = vrot.lane.b32.xlu0 %v1389_v61, %s1410_s8  ;;  %v1391_v62 = vpop.eup %1390 }
 0x1fd   : > { %v1393_v63 = vpop.eup %1392 }
 0x1fe   : > { %969 = vrot.lane.b32.xlu1 %v1393_v63, %s1410_s8  ;;  %971 = vrot.lane.b32.xlu0 %v1391_v62, %s1410_s8  ;;  %v1395_v0 = vpop.eup %1394 }
 0x1ff   : > { %v1397_v5 = vpop.eup %1396 }
 0x200   : > { %v921_v6 = vadd.f32 1.0, %v1397_v5 }
 0x202   : > { %973 = vrot.lane.b32.xlu1 %v1395_v0, %s1410_s8  ;;  %1398 = vrcp.f32 %v921_v6 }
 0x20f   : > { %v1399_v10 = vpop.eup %1398 }
 0x210   : > { %v926_v12 = vrot.slane %v1399_v10, %v925_v9 }
 0x251   : > { %v948_v11 = vpop.permute.xlu1 %947 }
 0x252   : > { %v994_v13 = vsel %vm991_vm1, %v926_v12, %v948_v11 }
 0x253   : > { %1010 = vst [vmem:[%s1619_s9 + $0x10] sm:$0xff] %v994_v13  ;;  %v944_v14 = vpop.permute.xlu0 %943 }
 0x254   : > { %v992_v16 = vsel %vm991_vm1, %v926_v12, %v944_v14 }
 0x255   : > { %1008 = vst [vmem:[%s1619_s9] sm:$0xff] %v992_v16  ;;  %v950_v17 = vpop.permute.xlu1 %949 }
 0x256   : > { %v995_v18 = vsel %vm991_vm1, %v926_v12, %v950_v17 }
 0x257   : > { %1011 = vst [vmem:[%s1619_s9 + $0x18] sm:$0xff] %v995_v18  ;;  %v946_v19 = vpop.permute.xlu0 %945 }
 0x258   : > { %v993_v20 = vsel %vm991_vm1, %v926_v12, %v946_v19 }
 0x259   : > { %1009 = vst [vmem:[%s1619_s9 + $0x8] sm:$0xff] %v993_v20 }
 0x25b   : > { %v956_v21 = vpop.permute.xlu0 %955 }
 0x25c   : > { %v998_v22 = vsel %vm991_vm1, %v926_v12, %v956_v21 }
 0x25d   : > { %1014 = vst [vmem:[%s1619_s9 + $0x30] sm:$0xff] %v998_v22  ;;  %v958_v23 = vpop.permute.xlu1 %957 }
 0x25e   : > { %v999_v24 = vsel %vm991_vm1, %v926_v12, %v958_v23 }
 0x25f   : > { %1015 = vst [vmem:[%s1619_s9 + $0x38] sm:$0xff] %v999_v24  ;;  %v952_v25 = vpop.permute.xlu0 %951 }
 0x260   : > { %v996_v26 = vsel %vm991_vm1, %v926_v12, %v952_v25 }
 0x261   : > { %1012 = vst [vmem:[%s1619_s9 + $0x20] sm:$0xff] %v996_v26  ;;  %v954_v27 = vpop.permute.xlu1 %953 }
 0x262   : > { %v997_v28 = vsel %vm991_vm1, %v926_v12, %v954_v27 }
 0x263   : > { %1013 = vst [vmem:[%s1619_s9 + $0x28] sm:$0xff] %v997_v28  ;;  %v964_v29 = vpop.permute.xlu0 %963 }
 0x264   : > { %v1002_v30 = vsel %vm991_vm1, %v926_v12, %v964_v29 }
 0x265   : > { %1018 = vst [vmem:[%s1619_s9 + $0x50] sm:$0xff] %v1002_v30 }
 0x266   : > { %v966_v31 = vpop.permute.xlu1 %965 }
 0x267   : > { %v1003_v32 = vsel %vm991_vm1, %v926_v12, %v966_v31  ;;  %v960_v33 = vpop.permute.xlu0 %959 }
 0x268   : > { %1019 = vst [vmem:[%s1619_s9 + $0x58] sm:$0xff] %v1003_v32  ;;  %v1000_v34 = vsel %vm991_vm1, %v926_v12, %v960_v33 }
 0x269   : > { %1016 = vst [vmem:[%s1619_s9 + $0x40] sm:$0xff] %v1000_v34 }
 0x26a   : > { %v962_v35 = vpop.permute.xlu1 %961 }
 0x26b   : > { %v1001_v15 = vsel %vm991_vm1, %v926_v12, %v962_v35 }
 0x26c   : > { %1017 = vst [vmem:[%s1619_s9 + $0x48] sm:$0xff] %v1001_v15  ;;  %v968_v36 = vpop.permute.xlu0 %967 }
 0x26d   : > { %v1004_v37 = vsel %vm991_vm1, %v926_v12, %v968_v36 }
 0x26e   : > { %1020 = vst [vmem:[%s1619_s9 + $0x60] sm:$0xff] %v1004_v37 }
 0x270   : > { %v970_v38 = vpop.permute.xlu1 %969  ;;  %v972_v39 = vpop.permute.xlu0 %971 }
 0x271   : > { %v1005_v40 = vsel %vm991_vm1, %v926_v12, %v970_v38  ;;  %v1006_v41 = vsel %vm991_vm1, %v926_v12, %v972_v39 }
 0x272   : > { %1021 = vst [vmem:[%s1619_s9 + $0x68] sm:$0xff] %v1005_v40  ;;  %1022 = vst [vmem:[%s1619_s9 + $0x70] sm:$0xff] %v1006_v41 }
 0x274   : > { %v974_v42 = vpop.permute.xlu1 %973 }
 0x275   : > { %v1007_v43 = vsel %vm991_vm1, %v926_v12, %v974_v42 }
 0x276   : > { %1023 = vst [vmem:[%s1619_s9 + $0x78] sm:$0xff] %v1007_v43 }
 0x277 PF: > { %s16_s21 = sadd.s32 1, %s1406_s21  }
 0x278   : > { %p13_p4 = scmp.ge.s32.totalorder %s16_s21, 4  }
 0x27a   :  { %15 = sbr.rel (!%p13_p4) target bundleno = 1 (0x1), region = 74 }

</bundles_post_ra>
